<compile_context>
chip_gen: v5e
topology: v5e:2x2
jax: 0.10.0
libtpu: 0.0.40
codegen_flags: <defaults>
</compile_context>

<pallas_src>
import functools

import jax
import jax.numpy as jnp
from jax.experimental import pallas as pl
from jax.experimental.pallas import tpu as pltpu

_IGNORE_INDEX = -100  # PyTorch F.cross_entropy default


def _ce_kernel(feat_ref, target_ref, col_ref, stats_ref, m_sc, l_sc, p_sc, *,
               n_rows, n_cols, tile_n, ignore_index, mask_cols):
    i = pl.program_id(0)   # row-tile index ("parallel")
    j = pl.program_id(1)   # C-chunk index ("arbitrary", innermost)

    @pl.when(j == 0)
    def _init():
        m_sc[...] = jnp.full_like(m_sc, -jnp.inf)
        l_sc[...] = jnp.zeros_like(l_sc)
        p_sc[...] = jnp.zeros_like(p_sc)

    x_raw = feat_ref[...]        # (tile_n, tile_c), input dtype (f32 or bf16)
    tgt = target_ref[...]        # (tile_n, 1) int32
    col = col_ref[...]           # (1, tile_c) int32 global column indices

    # Target-logit gather on the raw dtype (exactly one non-zero per row, so
    # the row sum is exact regardless of dtype).
    hit = col == tgt                                    # (tile_n, tile_c)
    picked = jnp.sum(jnp.where(hit, x_raw, jnp.zeros((), x_raw.dtype)),
                     axis=-1, keepdims=True)            # (tile_n, 1)
    p_sc[...] += picked.astype(jnp.float32)

    # Online logsumexp in f32 (v5e has no bf16 VPU/EUP; numerics match ref).
    x = x_raw.astype(jnp.float32)
    if mask_cols:                                       # last C chunk may be padded
        x = jnp.where(col < n_cols, x, -jnp.inf)
    m_prev = m_sc[...]
    m_new = jnp.maximum(m_prev, jnp.max(x, axis=-1, keepdims=True))
    l_sc[...] = (l_sc[...] * jnp.exp(m_prev - m_new)
                 + jnp.sum(jnp.exp(x - m_new), axis=-1, keepdims=True))
    m_sc[...] = m_new

    # Finalize: per-tile partial loss sum + valid-row count, lane-dense store.
    @pl.when(j == pl.num_programs(1) - 1)
    def _finalize():
        row = i * tile_n + jax.lax.broadcasted_iota(jnp.int32, (tile_n, 1), 0)
        valid = (row < n_rows) & (tgt != ignore_index)
        nll = m_sc[...] + jnp.log(l_sc[...]) - p_sc[...]
        loss_sum = jnp.sum(jnp.where(valid, nll, 0.0))
        cnt = jnp.sum(valid.astype(jnp.float32))
        lane = jax.lax.broadcasted_iota(jnp.int32, (1, 1, 128), 2)
        stats_ref[...] = jnp.where(lane == 0, loss_sum,
                                   jnp.where(lane == 1, cnt, 0.0))


def _round_up(x, m):
    return (x + m - 1) // m * m


def _sublane_multiple(dtype):
    # Native packed-tile sublane count: 8 for 4-byte, 16 for 2-byte, 32 for 1-byte.
    return max(8, 32 // jnp.dtype(dtype).itemsize)


def _vmem_budgets():
    cap = 64 * 1024 * 1024
    try:
        cap = int(pltpu.get_tpu_info().vmem_capacity_bytes)
    except Exception:
        pass  # conservative default (v7x-class 64 MiB per TensorCore)
    if cap <= 64 * 1024 * 1024:
        return 36 * 1024 * 1024, 48 * 1024 * 1024   # (working-set budget, vmem limit)
    return 72 * 1024 * 1024, 96 * 1024 * 1024       # v5e / v6e (128 MiB)


def _choose_tiles(n, c, itemsize, sublane, tile_n, tile_c):
    ws_budget, vmem_limit = _vmem_budgets()
    # VMEM bytes per streamed element: 2x double-buffered feat block plus
    # ~3x f32 temporaries (cast / shifted / exp) inside the kernel.
    per_elem = 2 * itemsize + 3 * 4
    n_pad = _round_up(n, sublane)

    if tile_c is None:
        rows_full_c = (ws_budget // (c * per_elem)) // sublane * sublane
        if rows_full_c >= min(n_pad, 4 * sublane):
            tile_c = c                                   # full-C blocks
        else:                                            # vocab-scale C: tile C
            rows_target = 256
            tile_c = max(128, (ws_budget // (rows_target * per_elem)) // 128 * 128)
            tile_c = min(tile_c, _round_up(c, 128))
    elif tile_c >= c:
        tile_c = c
    else:
        tile_c = _round_up(tile_c, 128)

    if tile_n is None:
        rows = (ws_budget // (tile_c * per_elem)) // sublane * sublane
        tile_n = max(sublane, min(rows, n_pad))
    else:
        tile_n = max(sublane, _round_up(tile_n, sublane))

    return tile_n, tile_c, vmem_limit


def softmax_loss(feat, target, ignore_index=_IGNORE_INDEX, tile_n=None, tile_c=None):
    """Pallas equivalent of SoftmaxLoss().forward(feat, target).

    feat:   (N, C) float logits (f32 or bf16)
    target: (N,)   integer class indices
    returns scalar f32 mean cross-entropy over non-ignored rows.
    """
    n, c = feat.shape
    itemsize = jnp.dtype(feat.dtype).itemsize
    sublane = _sublane_multiple(feat.dtype)
    tile_n, tile_c, vmem_limit = _choose_tiles(n, c, itemsize, sublane, tile_n, tile_c)

    num_row_tiles = pl.cdiv(n, tile_n)
    num_c_tiles = pl.cdiv(c, tile_c)
    c_pad = num_c_tiles * tile_c
    mask_cols = c_pad != c

    target_2d = target.astype(jnp.int32).reshape(n, 1)
    col_ids = jax.lax.broadcasted_iota(jnp.int32, (1, c_pad), 1)

    kernel = functools.partial(
        _ce_kernel, n_rows=n, n_cols=c, tile_n=tile_n,
        ignore_index=ignore_index, mask_cols=mask_cols)

    stats = pl.pallas_call(
        kernel,
        out_shape=jax.ShapeDtypeStruct((num_row_tiles, 1, 128), jnp.float32),
        grid=(num_row_tiles, num_c_tiles),
        in_specs=[
            pl.BlockSpec((tile_n, tile_c), lambda i, j: (i, j)),
            pl.BlockSpec((tile_n, 1), lambda i, j: (i, 0)),
            pl.BlockSpec((1, tile_c), lambda i, j: (0, j)),
        ],
        out_specs=pl.BlockSpec((1, 1, 128), lambda i, j: (i, 0, 0)),
        scratch_shapes=[pltpu.VMEM((tile_n, 1), jnp.float32)] * 3,
        compiler_params=pltpu.CompilerParams(
            dimension_semantics=("parallel", "arbitrary"),
            vmem_limit_bytes=vmem_limit,
        ),
        cost_estimate=pl.CostEstimate(
            flops=6 * n * c,
            transcendentals=n * c,
            bytes_accessed=n * c * itemsize + n * 4 + num_row_tiles * 512,
        ),
    )(feat, target_2d, col_ids)

    total = jnp.sum(stats[:, 0, 0])
    denom = jnp.sum(stats[:, 0, 1])
    # NaN when every target == ignore_index, matching F.cross_entropy behavior.
    return total / denom


if __name__ == "__main__":
    key = jax.random.PRNGKey(0)
    k_feat, k_tgt = jax.random.split(key)

    def ref_loss(feat, target):
        logp = jax.nn.log_softmax(feat.astype(jnp.float32), axis=-1)
        return -jnp.mean(logp[jnp.arange(feat.shape[0]), target])

    # 1) small f32, auto tiles (single row tile, single C chunk)
    N, C = 20, 32
    feat = jax.random.normal(k_feat, (N, C), dtype=jnp.float32)
    target = jax.random.randint(k_tgt, (N,), 0, C, dtype=jnp.int32)
    out = jax.block_until_ready(softmax_loss(feat, target))
    assert jnp.allclose(out, ref_loss(feat, target), atol=1e-5, rtol=1e-5), out

    # 2) forced tile_n=8 -> multiple row tiles with a padded last tile
    out = jax.block_until_ready(softmax_loss(feat, target, tile_n=8))
    assert jnp.allclose(out, ref_loss(feat, target), atol=1e-5, rtol=1e-5), out

    # 3) bf16 logits, sublane-16 row tiles
    feat_bf16 = feat.astype(jnp.bfloat16)
    out = jax.block_until_ready(softmax_loss(feat_bf16, target, tile_n=16))
    assert jnp.allclose(out, ref_loss(feat_bf16, target), atol=1e-4), out

    # 4) C-tiled online-logsumexp path (C a multiple of the 128-lane chunk)
    N2, C2 = 24, 384
    feat2 = jax.random.normal(k_feat, (N2, C2), dtype=jnp.float32)
    target2 = jax.random.randint(k_tgt, (N2,), 0, C2, dtype=jnp.int32)
    out = jax.block_until_ready(softmax_loss(feat2, target2, tile_n=8, tile_c=128))
    assert jnp.allclose(out, ref_loss(feat2, target2), atol=1e-5, rtol=1e-5), out

    # 5) C-tiled path with a ragged last chunk (exercises column masking)
    N3, C3 = 20, 200
    feat3 = jax.random.normal(k_feat, (N3, C3), dtype=jnp.float32)
    target3 = jax.random.randint(k_tgt, (N3,), 0, C3, dtype=jnp.int32)
    out = jax.block_until_ready(softmax_loss(feat3, target3, tile_c=128))
    assert jnp.allclose(out, ref_loss(feat3, target3), atol=1e-5, rtol=1e-5), out

    print("KERNEL_OK")
</pallas_src>

<mosaic_0001>
module attributes {stable_mosaic.version = 11 : i64} {
  func.func @_ce_kernel(%arg0: i32, %arg1: i32, %arg2: memref<24x32xf32, #tpu.memory_space<vmem>>, %arg3: memref<24x1xi32, #tpu.memory_space<vmem>>, %arg4: memref<1x32xi32, #tpu.memory_space<vmem>>, %arg5: memref<1x1x128xf32, #tpu.memory_space<vmem>>, %arg6: memref<24x1xf32, #tpu.memory_space<vmem>>, %arg7: memref<24x1xf32, #tpu.memory_space<vmem>>, %arg8: memref<24x1xf32, #tpu.memory_space<vmem>>) attributes {dimension_semantics = [#tpu.dimension_semantics<parallel>, #tpu.dimension_semantics<arbitrary>], iteration_bounds = array<i64: 1, 1>, scalar_prefetch = 0 : i64, scratch_operands = 3 : i64, tpu.core_type = #tpu.core_type<tc>, window_params = [{transform_indices = @transform_0, window_bounds = array<i64: 24, 32>}, {transform_indices = @transform_1, window_bounds = array<i64: 24, 1>}, {transform_indices = @transform_2, window_bounds = array<i64: 1, 32>}, {transform_indices = @transform_3, window_bounds = array<i64: 1, 1, 128>}]} {
    %c0_i32 = arith.constant 0 : i32
    %0 = arith.cmpi eq, %arg1, %c0_i32 : i32
    %1 = arith.extui %0 : i1 to i32
    %c0_i32_0 = arith.constant 0 : i32
    %2 = arith.cmpi ne, %1, %c0_i32_0 : i32
    scf.if %2 {
      %cst_23 = arith.constant 0xFF800000 : f32
      %35 = vector.broadcast %cst_23 : f32 to vector<24x1xf32>
      %c0_24 = arith.constant 0 : index
      %c0_25 = arith.constant 0 : index
      %36 = vector.load %arg6[%c0_24, %c0_25] : memref<24x1xf32, #tpu.memory_space<vmem>>, vector<24x1xf32>
      tpu.vector_store %arg6[%c0_24, %c0_25], %35 {strides = array<i32>} : memref<24x1xf32, #tpu.memory_space<vmem>>, vector<24x1xf32>,
      %cst_26 = arith.constant 0.000000e+00 : f32
      %37 = vector.broadcast %cst_26 : f32 to vector<24x1xf32>
      %c0_27 = arith.constant 0 : index
      %c0_28 = arith.constant 0 : index
      %38 = vector.load %arg7[%c0_27, %c0_28] : memref<24x1xf32, #tpu.memory_space<vmem>>, vector<24x1xf32>
      tpu.vector_store %arg7[%c0_27, %c0_28], %37 {strides = array<i32>} : memref<24x1xf32, #tpu.memory_space<vmem>>, vector<24x1xf32>,
      %cst_29 = arith.constant 0.000000e+00 : f32
      %39 = vector.broadcast %cst_29 : f32 to vector<24x1xf32>
      %c0_30 = arith.constant 0 : index
      %c0_31 = arith.constant 0 : index
      %40 = vector.load %arg8[%c0_30, %c0_31] : memref<24x1xf32, #tpu.memory_space<vmem>>, vector<24x1xf32>
      tpu.vector_store %arg8[%c0_30, %c0_31], %39 {strides = array<i32>} : memref<24x1xf32, #tpu.memory_space<vmem>>, vector<24x1xf32>,
    } else {
    }
    %c0 = arith.constant 0 : index
    %c0_1 = arith.constant 0 : index
    %3 = vector.load %arg2[%c0, %c0_1] : memref<24x32xf32, #tpu.memory_space<vmem>>, vector<24x32xf32>
    %c0_2 = arith.constant 0 : index
    %c0_3 = arith.constant 0 : index
    %4 = vector.load %arg3[%c0_2, %c0_3] : memref<24x1xi32, #tpu.memory_space<vmem>>, vector<24x1xi32>
    %c0_4 = arith.constant 0 : index
    %c0_5 = arith.constant 0 : index
    %5 = vector.load %arg4[%c0_4, %c0_5] : memref<1x32xi32, #tpu.memory_space<vmem>>, vector<1x32xi32>
    %6 = vector.broadcast %5 : vector<1x32xi32> to vector<24x32xi32>
    %7 = vector.broadcast %4 : vector<24x1xi32> to vector<24x32xi32>
    %8 = arith.cmpi eq, %6, %7 : vector<24x32xi32>
    %cst = arith.constant 0.000000e+00 : f32
    %9 = vector.broadcast %cst : f32 to vector<24x32xf32>
    %10 = arith.select %8, %3, %9 : vector<24x32xi1>, vector<24x32xf32>
    %cst_6 = arith.constant dense<0.000000e+00> : vector<24xf32>
    %11 = vector.multi_reduction <add>, %10, %cst_6 [1] : vector<24x32xf32> to vector<24xf32>
    %12 = vector.shape_cast %11 : vector<24xf32> to vector<24x1xf32>
    %c0_7 = arith.constant 0 : index
    %c0_8 = arith.constant 0 : index
    %13 = vector.load %arg8[%c0_7, %c0_8] : memref<24x1xf32, #tpu.memory_space<vmem>>, vector<24x1xf32>
    %14 = arith.addf %13, %12 : vector<24x1xf32>
    %c0_9 = arith.constant 0 : index
    %c0_10 = arith.constant 0 : index
    %15 = vector.load %arg8[%c0_9, %c0_10] : memref<24x1xf32, #tpu.memory_space<vmem>>, vector<24x1xf32>
    tpu.vector_store %arg8[%c0_9, %c0_10], %14 {strides = array<i32>} : memref<24x1xf32, #tpu.memory_space<vmem>>, vector<24x1xf32>,
    %c0_11 = arith.constant 0 : index
    %c0_12 = arith.constant 0 : index
    %16 = vector.load %arg6[%c0_11, %c0_12] : memref<24x1xf32, #tpu.memory_space<vmem>>, vector<24x1xf32>
    %cst_13 = arith.constant dense<0xFF800000> : vector<24xf32>
    %17 = vector.multi_reduction <maximumf>, %3, %cst_13 [1] : vector<24x32xf32> to vector<24xf32>
    %18 = vector.shape_cast %17 : vector<24xf32> to vector<24x1xf32>
    %19 = arith.maximumf %16, %18 : vector<24x1xf32>
    %c0_14 = arith.constant 0 : index
    %c0_15 = arith.constant 0 : index
    %20 = vector.load %arg7[%c0_14, %c0_15] : memref<24x1xf32, #tpu.memory_space<vmem>>, vector<24x1xf32>
    %21 = arith.subf %16, %19 : vector<24x1xf32>
    %22 = math.exp %21 : vector<24x1xf32>
    %23 = arith.mulf %20, %22 : vector<24x1xf32>
    %24 = vector.broadcast %19 : vector<24x1xf32> to vector<24x32xf32>
    %25 = arith.subf %3, %24 : vector<24x32xf32>
    %26 = math.exp %25 : vector<24x32xf32>
    %cst_16 = arith.constant dense<0.000000e+00> : vector<24xf32>
    %27 = vector.multi_reduction <add>, %26, %cst_16 [1] : vector<24x32xf32> to vector<24xf32>
    %28 = vector.shape_cast %27 : vector<24xf32> to vector<24x1xf32>
    %29 = arith.addf %23, %28 : vector<24x1xf32>
    %c0_17 = arith.constant 0 : index
    %c0_18 = arith.constant 0 : index
    %30 = vector.load %arg7[%c0_17, %c0_18] : memref<24x1xf32, #tpu.memory_space<vmem>>, vector<24x1xf32>
    tpu.vector_store %arg7[%c0_17, %c0_18], %29 {strides = array<i32>} : memref<24x1xf32, #tpu.memory_space<vmem>>, vector<24x1xf32>,
    %c0_19 = arith.constant 0 : index
    %c0_20 = arith.constant 0 : index
    %31 = vector.load %arg6[%c0_19, %c0_20] : memref<24x1xf32, #tpu.memory_space<vmem>>, vector<24x1xf32>
    tpu.vector_store %arg6[%c0_19, %c0_20], %19 {strides = array<i32>} : memref<24x1xf32, #tpu.memory_space<vmem>>, vector<24x1xf32>,
    %c0_i32_21 = arith.constant 0 : i32
    %32 = arith.cmpi eq, %arg1, %c0_i32_21 : i32
    %33 = arith.extui %32 : i1 to i32
    %c0_i32_22 = arith.constant 0 : i32
    %34 = arith.cmpi ne, %33, %c0_i32_22 : i32
    scf.if %34 {
      %c24_i32 = arith.constant 24 : i32
      %35 = arith.muli %arg0, %c24_i32 : i32
      %36 = tpu.iota {dimensions = array<i32: 0>} : vector<24x1xi32>
      %37 = vector.broadcast %35 : i32 to vector<24x1xi32>
      %38 = arith.addi %37, %36 : vector<24x1xi32>
      %c20_i32 = arith.constant 20 : i32
      %39 = vector.broadcast %c20_i32 : i32 to vector<24x1xi32>
      %40 = arith.cmpi slt, %38, %39 : vector<24x1xi32>
      %c-100_i32 = arith.constant -100 : i32
      %41 = vector.broadcast %c-100_i32 : i32 to vector<24x1xi32>
      %42 = arith.cmpi ne, %4, %41 : vector<24x1xi32>
      %43 = arith.andi %40, %42 : vector<24x1xi1>
      %c0_23 = arith.constant 0 : index
      %c0_24 = arith.constant 0 : index
      %44 = vector.load %arg6[%c0_23, %c0_24] : memref<24x1xf32, #tpu.memory_space<vmem>>, vector<24x1xf32>
      %c0_25 = arith.constant 0 : index
      %c0_26 = arith.constant 0 : index
      %45 = vector.load %arg7[%c0_25, %c0_26] : memref<24x1xf32, #tpu.memory_space<vmem>>, vector<24x1xf32>
      %46 = math.log %45 : vector<24x1xf32>
      %47 = arith.addf %44, %46 : vector<24x1xf32>
      %c0_27 = arith.constant 0 : index
      %c0_28 = arith.constant 0 : index
      %48 = vector.load %arg8[%c0_27, %c0_28] : memref<24x1xf32, #tpu.memory_space<vmem>>, vector<24x1xf32>
      %49 = arith.subf %47, %48 : vector<24x1xf32>
      %cst_29 = arith.constant 0.000000e+00 : f32
      %50 = vector.broadcast %cst_29 : f32 to vector<24x1xf32>
      %51 = arith.select %43, %49, %50 : vector<24x1xi1>, vector<24x1xf32>
      %52 = vector.shape_cast %51 : vector<24x1xf32> to vector<1x24x1xf32>
      %cst_30 = arith.constant dense<0.000000e+00> : vector<1xf32>
      %53 = vector.multi_reduction <add>, %52, %cst_30 [1, 2] : vector<1x24x1xf32> to vector<1xf32>
      %54 = vector.shape_cast %53 : vector<1xf32> to vector<1x1x1xf32>
      %55 = vector.extract %54[0, 0, 0] : f32 from vector<1x1x1xf32>
      %56 = arith.extui %43 : vector<24x1xi1> to vector<24x1xi32>
      %57 = arith.sitofp %56 : vector<24x1xi32> to vector<24x1xf32>
      %58 = vector.shape_cast %57 : vector<24x1xf32> to vector<1x24x1xf32>
      %cst_31 = arith.constant dense<0.000000e+00> : vector<1xf32>
      %59 = vector.multi_reduction <add>, %58, %cst_31 [1, 2] : vector<1x24x1xf32> to vector<1xf32>
      %60 = vector.shape_cast %59 : vector<1xf32> to vector<1x1x1xf32>
      %61 = vector.extract %60[0, 0, 0] : f32 from vector<1x1x1xf32>
      %62 = tpu.iota {dimensions = array<i32: 2>} : vector<1x1x128xi32>
      %c0_i32_32 = arith.constant 0 : i32
      %63 = vector.broadcast %c0_i32_32 : i32 to vector<1x1x128xi32>
      %64 = arith.cmpi eq, %62, %63 : vector<1x1x128xi32>
      %c1_i32 = arith.constant 1 : i32
      %65 = vector.broadcast %c1_i32 : i32 to vector<1x1x128xi32>
      %66 = arith.cmpi eq, %62, %65 : vector<1x1x128xi32>
      %cst_33 = arith.constant 0.000000e+00 : f32
      %67 = vector.broadcast %61 : f32 to vector<1x1x128xf32>
      %68 = vector.broadcast %cst_33 : f32 to vector<1x1x128xf32>
      %69 = arith.select %66, %67, %68 : vector<1x1x128xi1>, vector<1x1x128xf32>
      %70 = vector.broadcast %55 : f32 to vector<1x1x128xf32>
      %71 = arith.select %64, %70, %69 : vector<1x1x128xi1>, vector<1x1x128xf32>
      %c0_34 = arith.constant 0 : index
      %c0_35 = arith.constant 0 : index
      %c0_36 = arith.constant 0 : index
      %72 = vector.load %arg5[%c0_34, %c0_35, %c0_36] : memref<1x1x128xf32, #tpu.memory_space<vmem>>, vector<1x1x128xf32>
      tpu.vector_store %arg5[%c0_34, %c0_35, %c0_36], %71 {strides = array<i32>} : memref<1x1x128xf32, #tpu.memory_space<vmem>>, vector<1x1x128xf32>,
    } else {
    }
    return
  }
  func.func @transform_0(%arg0: i32, %arg1: i32) -> (i32, i32) {
    %c0_i32 = arith.constant 0 : i32
    return %arg0, %arg1 : i32, i32
  }
  func.func @transform_1(%arg0: i32, %arg1: i32) -> (i32, i32) {
    %c0_i32 = arith.constant 0 : i32
    %c0_i32_0 = arith.constant 0 : i32
    return %arg0, %c0_i32 : i32, i32
  }
  func.func @transform_2(%arg0: i32, %arg1: i32) -> (i32, i32) {
    %c0_i32 = arith.constant 0 : i32
    %c0_i32_0 = arith.constant 0 : i32
    return %c0_i32, %arg1 : i32, i32
  }
  func.func @transform_3(%arg0: i32, %arg1: i32) -> (i32, i32, i32) {
    %c0_i32 = arith.constant 0 : i32
    %c0_i32_0 = arith.constant 0 : i32
    %c0_i32_1 = arith.constant 0 : i32
    return %arg0, %c0_i32, %c0_i32_0 : i32, i32, i32
  }
}

</mosaic_0001>

<bundles_post_ra>
// kernel: tpu_custom_call.1
= control target key start
LH: loop header
LB: loop body
LE: loop exit
PB: predicated region body
PF: predicated region fallthrough
CT: control target
= control target key end

     0   :  { %vm52_vm0 = vcmask 261120   ;;  %s449_s0 = inlined_call_operand.vmem [shape: f32[20,32], index: 0, kind: input, shape index: {}]   ;;  %s450_s1 = inlined_call_operand.vmem [shape: s32[20,1], index: 1, kind: input, shape index: {}]   ;;  %s451_s2 = inlined_call_operand.vmem [shape: s32[1,32], index: 2, kind: input, shape index: {}]   ;;  %s452_s3 = inlined_call_operand.hbm [shape: f32[1,1,128], index: 3, kind: output, shape index: {}]  }
   0x1   :  { %v334_v0 = vld [vmem:[%s449_s0] sm:$0xff]  ;;  %v339_v1 = vld [vmem:[%s449_s0 + $0x10] sm:$0xff] }
   0x2   :  { %v75_v2 = vsel %vm52_vm0, %v334_v0, -inf  ;;  %v81_v3 = vsel %vm52_vm0, %v339_v1, -inf }
   0x3   :  { %76 = vmax.xlane.f32.xlu0 %v75_v2  ;;  %82 = vmax.xlane.f32.xlu1 %v81_v3 }
   0x4   :  { %8 = vsyncpa [#allocation6], 0  ;;  %v30_v4 = vld [vmem:[%s449_s0 + $0x8] sm:$0xff]  ;;  %vm19_vm1 = vcmask 7168   ;;  %v307_v6 = vmov -inf   ;;  %v308_v7 = vmov 0   ;;  %v148_v49 = vlaneseq }
   0x5   :  { %v78_v5 = vsel %vm52_vm0, %v30_v4, -inf  ;;  %20 = vst.msk [vmem:[#allocation2] sm:$0xff] %vm19_vm1, %v307_v6  ;;  %259 = vset.pattern.permute.xlu1 %v308_v7  ;;  %260 = vset.pattern.permute.xlu2 %v308_v7  ;;  %v309_v8 = vmov 0.0   ;;  %v367_v9 = vld [vmem:[%s450_s1] sm:$0xff]  ;;  %v389_v22 = vld [vmem:[%s450_s1 + $0x8] sm:$0xff]  ;;  %v34_v23 = vld [vmem:[%s450_s1 + $0x10] sm:$0xff] }
   0x6   :  { %21 = vst.msk [vmem:[#allocation2 + $0x8] sm:$0xff] %vm19_vm1, %v307_v6  ;;  %261 = vset.pattern.permute.xlu0 %v308_v7  ;;  %v262_v32 = vld [vmem:[%s451_s2] ss:$0 sm:$0xff]  ;;  %v149_v51 = vshrl.u32 %v148_v49, 7  ;;  %vm159_vm5 = vcmp.ne.s32.totalorder %v367_v9, 4294967196  ;;  %vm161_vm7 = vcmp.ne.s32.totalorder %v34_v23, 4294967196 }
   0x7   :  { %22 = vst.msk [vmem:[#allocation2 + $0x10] sm:$0xff] %vm19_vm1, %v307_v6  ;;  %vm160_vm8 = vcmp.ne.s32.totalorder %v389_v22, 4294967196  ;;  %v248_v57 = vsel %vm159_vm5, 1.0, %v309_v8  ;;  %v224_v59 = vand.u32 127, %v148_v49  ;;  %s310_s1 = smov [#allocation5]   ;;  %s239_s28 = sshll.u32 %s452_s3, 4  ;;  %s240_s28 = int_to_ptr.hbm [resolvable:$true] %s239_s28 }
   0x8   :  { %23 = vst.msk [vmem:[#allocation3] sm:$0xff] %vm19_vm1, %v309_v8  ;;  %v151_v52 = vadd.s32 16, %v149_v51  ;;  %v249_v58 = vsel %vm160_vm8, 1.0, %v309_v8  ;;  %s237_s2 = sshll.u32 %s310_s1, 4  ;;  %s238_s2 = int_to_ptr.vmem [resolvable:$true] %s237_s2 }
   0x9   :  { %24 = vst.msk [vmem:[#allocation3 + $0x8] sm:$0xff] %vm19_vm1, %v309_v8  ;;  %vm226_vm10 = vcmp.eq.s32.totalorder %v224_v59, 1  ;;  %vm225_vm11 = vcmp.eq.s32.totalorder %v224_v59, 0 }
   0xa   :  { %25 = vst.msk [vmem:[#allocation3 + $0x10] sm:$0xff] %vm19_vm1, %v309_v8  ;;  %vm158_vm6 = vcmp.lt.s32.totalorder %v151_v52, 20 }
   0xb   :  { %79 = vmax.xlane.f32.xlu0 %v78_v5  ;;  %26 = vst.msk [vmem:[#allocation4] sm:$0xff] %vm19_vm1, %v309_v8  ;;  %vm417_vm9 = vmand %vm158_vm6, %vm161_vm7 }
   0xc   :  { %27 = vst.msk [vmem:[#allocation4 + $0x8] sm:$0xff] %vm19_vm1, %v309_v8  ;;  %v370_v10 = vld [vmem:[#allocation2] sm:$0xff]  ;;  %v250_v63 = vsel %vm417_vm9, 1.0, %v309_v8 }
   0xd   :  { %28 = vst.msk [vmem:[#allocation4 + $0x10] sm:$0xff] %vm19_vm1, %v309_v8  ;;  %v73_v18 = vld [vmem:[#allocation2 + $0x8] sm:$0xff]  ;;  %v212_v5 = vsel %vm19_vm1, %v250_v63, 0.0 }
   0xe   :  { %v372_v11 = vld [vmem:[#allocation2 + $0x10] sm:$0xff] }
  0x10   :  { %v88_v55 = vld [vmem:[#allocation3 + $0x8] sm:$0xff] }
  0x11   :  { %v89_v3 = vld [vmem:[#allocation3 + $0x10] sm:$0xff] }
  0x13   :  { %v63_v6 = vld [vmem:[#allocation4 + $0x8] sm:$0xff] }
  0x1f   :  { %38 = vperm.xlu0 %261, %v367_v9  }
  0x76   :  { %v77_v12 = vpop.xlane.xlu0 %76  ;;  %v83_v13 = vpop.xlane.xlu1 %82 }
  0x77   :  { %v375_v14 = vmax.f32 %v370_v10, %v77_v12  ;;  %v86_v15 = vmax.f32 %v372_v11, %v83_v13 }
  0x79   :  { %v90_v16 = vsub.f32 %v370_v10, %v375_v14  ;;  %141 = vst.msk [vmem:[#allocation2] sm:$0xff] %vm19_vm1, %v375_v14  ;;  %104 = vperm.xlu1 %259, %v375_v14   ;;  %v92_v17 = vsub.f32 %v372_v11, %v86_v15 }
  0x7a   :  { %143 = vst.msk [vmem:[#allocation2 + $0x10] sm:$0xff] %vm19_vm1, %v86_v15 }
  0x7b   :  { %v97_v53 = vmul.f32 1.442695, %v92_v17  ;;  %v93_v62 = vmul.f32 1.442695, %v90_v16 }
  0x7e   :  { %v80_v19 = vpop.xlane.xlu0 %79 }
  0x7f   :  { %v85_v20 = vmax.f32 %v73_v18, %v80_v19 }
  0x81   :  { %v91_v21 = vsub.f32 %v73_v18, %v85_v20  ;;  %142 = vst.msk [vmem:[#allocation2 + $0x8] sm:$0xff] %vm19_vm1, %v85_v20  ;;  %109 = vperm.xlu2 %260, %v85_v20   ;;  %v62_v20 = vld [vmem:[#allocation4] sm:$0xff] }
  0x83   :  { %v95_v50 = vmul.f32 1.442695, %v91_v21 }
  0x89   :  { %114 = vperm.xlu2 %260, %v86_v15   ;;  %v87_v15 = vld [vmem:[#allocation3] sm:$0xff] }
  0x91   :  { %41 = vperm.xlu2 %260, %v389_v22   ;;  %v39_v41 = vpop.permute.xlu0 %38 }
  0x92   :  { %vm46_vm3 = vcmp.eq.s32.totalorder %v262_v32, %v39_v41 }
  0x93   :  { %v49_v44 = vsel %vm46_vm3, %v334_v0, 0.0 }
  0x94   :  { %v53_v45 = vsel %vm52_vm0, %v49_v44, 0.0  ;;  %v167_v44 = vld [vmem:[#allocation2 + $0x10] sm:$0xff] }
  0x99   :  { %44 = vperm.xlu2 %260, %v34_v23  }
  0xdb   :  { %v110_v24 = vpop.permute.xlu2 %109 }
  0xdc   :  { %v118_v25 = vsub.f32 %v30_v4, %v110_v24 }
  0xde   :  { %v122_v26 = vmul.f32 1.442695, %v118_v25 }
  0xe0   :  { %263 = vpow2.f32 %v122_v26 }
  0xe3   :  { %v115_v27 = vpop.permute.xlu2 %114 }
  0xe4   :  { %v119_v28 = vsub.f32 %v339_v1, %v115_v27 }
  0xe6   :  { %v264_v29 = vpop.eup %263  ;;  %v124_v30 = vmul.f32 1.442695, %v119_v28  ;;  %v166_v28 = vld [vmem:[#allocation2 + $0x8] sm:$0xff] }
  0xe7   :  { %v129_v31 = vsel %vm52_vm0, %v264_v29, 0.0  ;;  %v64_v29 = vld [vmem:[#allocation4 + $0x10] sm:$0xff] }
  0xe8   :  { %265 = vpow2.f32 %v124_v30  ;;  %130 = vadd.xlane.f32.xlu1 %v129_v31 }
  0xeb   :  { %v42_v33 = vpop.permute.xlu2 %41  ;;  %v105_v34 = vpop.permute.xlu1 %104 }
  0xec   :  { %vm47_vm2 = vcmp.eq.s32.totalorder %v262_v32, %v42_v33  ;;  %v117_v35 = vsub.f32 %v334_v0, %v105_v34  ;;  %v209_v0 = vsel %vm19_vm1, %v248_v57, 0.0 }
  0xed   :  { %v50_v36 = vsel %vm47_vm2, %v30_v4, 0.0 }
  0xee   :  { %v266_v37 = vpop.eup %265  ;;  %v120_v38 = vmul.f32 1.442695, %v117_v35  ;;  %v56_v39 = vsel %vm52_vm0, %v50_v36, 0.0 }
  0xef   :  { %v132_v40 = vsel %vm52_vm0, %v266_v37, 0.0 }
  0xf0   :  { %267 = vpow2.f32 %v120_v38  ;;  %133 = vadd.xlane.f32.xlu0 %v132_v40  ;;  %57 = vadd.xlane.f32.xlu1 %v56_v39  ;;  %v165_v38 = vld [vmem:[#allocation2] sm:$0xff] }
  0xf1   :  { %269 = vpow2.f32 %v95_v50 }
  0xf2   :  { %271 = vpow2.f32 %v97_v53 }
  0xf3   :  { %v45_v46 = vpop.permute.xlu2 %44  ;;  %273 = vpow2.f32 %v93_v62 }
  0xf4   :  { %vm48_vm4 = vcmp.eq.s32.totalorder %v262_v32, %v45_v46 }
  0xf5   :  { %v51_v47 = vsel %vm48_vm4, %v339_v1, 0.0  ;;  %v210_v1 = vsel %vm19_vm1, %v249_v58, 0.0 }
  0xf6   :  { %v268_v42 = vpop.eup %267  ;;  %v59_v48 = vsel %vm52_vm0, %v51_v47, 0.0  ;;  %v211_v4 = vadd.f32 %v210_v1, %v209_v0 }
  0xf7   :  { %v126_v43 = vsel %vm52_vm0, %v268_v42, 0.0  ;;  %v270_v54 = vpop.eup %269 }
  0xf8   :  { %127 = vadd.xlane.f32.xlu2 %v126_v43  ;;  %v100_v56 = vmul.f32 %v270_v54, %v88_v55  ;;  %v272_v2 = vpop.eup %271  ;;  %v213_v7 = vadd.f32 %v212_v5, %v211_v4 }
  0xf9   :  { %v101_v10 = vmul.f32 %v272_v2, %v89_v3  ;;  %v274_v8 = vpop.eup %273 }
  0xfa   :  { %v99_v17 = vmul.f32 %v274_v8, %v87_v15 }
 0x100   :  { %54 = vadd.xlane.f32.xlu2 %v53_v45 }
 0x108   :  { %60 = vadd.xlane.f32.xlu2 %v59_v48 }
 0x110   :  { %214 = vadd.xlane.f32.xlu2 %v213_v7 }
 0x15b   :  { %v131_v60 = vpop.xlane.xlu1 %130 }
 0x15c   :  { %v136_v61 = vadd.f32 %v131_v60, %v100_v56 }
 0x15e   :  { %139 = vst.msk [vmem:[#allocation3 + $0x8] sm:$0xff] %vm19_vm1, %v136_v61 }
 0x163   :  { %v134_v11 = vpop.xlane.xlu0 %133  ;;  %v58_v12 = vpop.xlane.xlu1 %57 }
 0x164   :  { %v137_v13 = vadd.f32 %v134_v11, %v101_v10  ;;  %v66_v14 = vadd.f32 %v63_v6, %v58_v12 }
 0x165   :  { %v169_v16 = vld [vmem:[#allocation3 + $0x8] sm:$0xff] }
 0x166   :  { %140 = vst.msk [vmem:[#allocation3 + $0x10] sm:$0xff] %vm19_vm1, %v137_v13  ;;  %275 = vlog2.f32 %v169_v16 }
 0x167   :  { %70 = vst.msk [vmem:[#allocation4 + $0x8] sm:$0xff] %vm19_vm1, %v66_v14 }
 0x16b   :  { %v128_v18 = vpop.xlane.xlu2 %127 }
 0x16c   :  { %v135_v19 = vadd.f32 %v128_v18, %v99_v17  ;;  %v276_v21 = vpop.eup %275 }
 0x16d   :  { %v170_v25 = vld [vmem:[#allocation3 + $0x10] sm:$0xff]  ;;  %v174_v27 = vmul.f32 0.6931472, %v276_v21 }
 0x16e   :  { %138 = vst.msk [vmem:[#allocation3] sm:$0xff] %vm19_vm1, %v135_v19  ;;  %v181_v34 = vld [vmem:[#allocation4 + $0x8] sm:$0xff] }
 0x16f   :  { %v178_v30 = vadd.f32 %v174_v27, %v166_v28 }
 0x171   :  { %v184_v37 = vsub.f32 %v178_v30, %v181_v34 }
 0x173   :  { %v55_v23 = vpop.xlane.xlu2 %54  ;;  %v187_v43 = vsel %vm160_vm8, %v184_v37, 0.0 }
 0x174   :  { %v65_v24 = vadd.f32 %v62_v20, %v55_v23  ;;  %v190_v48 = vsel %vm19_vm1, %v187_v43, 0.0 }
 0x175   :  { %v168_v26 = vld [vmem:[#allocation3] sm:$0xff] }
 0x176   :  { %69 = vst.msk [vmem:[#allocation4] sm:$0xff] %vm19_vm1, %v65_v24  ;;  %277 = vlog2.f32 %v168_v26 }
 0x177   :  { %279 = vlog2.f32 %v170_v25 }
 0x17b   :  { %v61_v31 = vpop.xlane.xlu2 %60 }
 0x17c   :  { %v278_v32 = vpop.eup %277  ;;  %v67_v33 = vadd.f32 %v64_v29, %v61_v31 }
 0x17d   :  { %v280_v35 = vpop.eup %279  ;;  %v172_v36 = vmul.f32 0.6931472, %v278_v32  ;;  %v180_v41 = vld [vmem:[#allocation4] sm:$0xff] }
 0x17e   :  { %71 = vst.msk [vmem:[#allocation4 + $0x10] sm:$0xff] %vm19_vm1, %v67_v33  ;;  %v176_v40 = vmul.f32 0.6931472, %v280_v35 }
 0x17f   :  { %v177_v39 = vadd.f32 %v172_v36, %v165_v38 }
 0x180   :  { %v179_v46 = vadd.f32 %v176_v40, %v167_v44 }
 0x181   :  { %v183_v42 = vsub.f32 %v177_v39, %v180_v41 }
 0x183   :  { %v186_v45 = vsel %vm159_vm5, %v183_v42, 0.0  ;;  %v215_v22 = vpop.xlane.xlu2 %214 }
 0x184   :  { %v189_v47 = vsel %vm19_vm1, %v186_v45, 0.0  ;;  %v216_v56 = vrot.slane %v215_v22, 4 }
 0x185   :  { %v182_v50 = vld [vmem:[#allocation4 + $0x10] sm:$0xff]  ;;  %v191_v51 = vadd.f32 %v190_v48, %v189_v47 }
 0x186   :  { %v185_v52 = vsub.f32 %v179_v46, %v182_v50  ;;  %v217_v57 = vadd.f32 %v216_v56, %v215_v22 }
 0x188   :  { %v188_v53 = vsel %vm417_vm9, %v185_v52, 0.0  ;;  %v218_v9 = vrot.slane %v217_v57, 2 }
 0x189   :  { %v192_v54 = vsel %vm19_vm1, %v188_v53, 0.0 }
 0x18a   :  { %v193_v55 = vadd.f32 %v192_v54, %v191_v51  ;;  %v219_v62 = vadd.f32 %v218_v9, %v217_v57 }
 0x18c   :  { %194 = vadd.xlane.f32.xlu1 %v193_v55  ;;  %v220_v1 = vrot.slane %v219_v62, 1 }
 0x18e   :  { %v221_v4 = vadd.f32 %v220_v1, %v219_v62 }
 0x1ff   :  { %v195_v58 = vpop.xlane.xlu1 %194 }
 0x200   :  { %v196_v60 = vrot.slane %v195_v58, 4 }
 0x202   :  { %v197_v61 = vadd.f32 %v196_v60, %v195_v58 }
 0x204   :  { %v198_v63 = vrot.slane %v197_v61, 2 }
 0x206   :  { %v199_v0 = vadd.f32 %v198_v63, %v197_v61 }
 0x208   :  { %v200_v2 = vrot.slane %v199_v0, 1 }
 0x20a   :  { %v201_v3 = vadd.f32 %v200_v2, %v199_v0 }
 0x20c   :  { %251 = vpush %v201_v3 }
 0x20d   :  { %253 = vpush %v221_v4 }
 0x23d   :  { %s252_s25 = spop %251 }
 0x23e   :  { %v229_v5 = vstv %s252_s25  ;;  %s254_s29 = spop %253 }
 0x23f   :  { %v227_v6 = vstv %s254_s29 }
 0x240   :  { %v228_v7 = vsel %vm226_vm10, %v227_v6, 0.0 }
 0x241   :  { %v230_v10 = vsel %vm225_vm11, %v229_v5, %v228_v7 }
 0x242   :  { %231 = vst [vmem:[#allocation5] sm:$0x1] %v230_v10 }
 0x243   :  { %242 = dma.vmem_to_hbm [thread:$0]  %s238_s2, 16, %s240_s28, [#allocation6]  }
 0x244   :  { %305 = dma.done.wait [#allocation6], 16  }
 0x245   :  { %306 = vsyncadd [#allocation6], 4294967280 }
 0x246   :  { %247 = vsyncpa [#allocation6], 1 }

</bundles_post_ra>
